<compile_context>
chip_gen: v5e
topology: v5e:2x2
jax: 0.10.0
libtpu: 0.0.40
codegen_flags: <defaults>
</compile_context>

<pallas_src>
import functools

import jax
import jax.numpy as jnp
from jax.experimental import pallas as pl
from jax.experimental.pallas import tpu as pltpu

LANE = 128      # vreg lane width
SUBLANE = 8     # vreg sublane count (f32)
LN_EPS = 1e-5   # torch.nn.LayerNorm default


def _round_up(x, m):
    return ((x + m - 1) // m) * m


def _make_fused_kernel(num_layers, true_hidden):
    """Fused tanh(layernorm(x @ W + b)) for `num_layers` stacked layers.

    `true_hidden[i]` is the *unpadded* feature count of layer i, used for the
    LayerNorm statistics (padded lanes are exactly zero by construction).
    """

    def kernel(x_ref, *refs):
        o_ref = refs[-1]
        layer_refs = refs[:-1]
        h = x_ref[...]                                   # (tile_rows, K0_pad) bf16
        for li in range(num_layers):                     # static unroll
            w_ref, b_ref, g_ref, be_ref = layer_refs[4 * li:4 * (li + 1)]
            # MXU matmul in bf16, accumulate in f32.
            y = jnp.dot(h.astype(jnp.bfloat16), w_ref[...],
                        preferred_element_type=jnp.float32)
            y = y + b_ref[...]                           # (tile, H_pad) + (1, H_pad)
            # One-pass LayerNorm over the TRUE feature count (padded cols == 0).
            inv_h = 1.0 / float(true_hidden[li])
            s1 = jnp.sum(y, axis=-1, keepdims=True)
            s2 = jnp.sum(y * y, axis=-1, keepdims=True)
            mean = s1 * inv_h
            var = jnp.maximum(s2 * inv_h - mean * mean, 0.0)
            y = (y - mean) * jax.lax.rsqrt(var + LN_EPS)
            # gamma is 0 on padded lanes -> padded output lanes stay exactly 0.
            h = jnp.tanh(y * g_ref[...] + be_ref[...])   # f32
        o_ref[...] = h.astype(o_ref.dtype)

    return kernel


def _fused_dummy_rnn(x2d_pad, padded_params, true_hidden, tile_rows, out_dtype):
    """x2d_pad: (R_pad, K0_pad) bf16 -> (R_pad, H_last_pad) out_dtype."""
    R_pad, K0_pad = x2d_pad.shape
    num_layers = len(padded_params)
    H_last_pad = padded_params[-1][0].shape[1]
    grid = (R_pad // tile_rows,)

    in_specs = [pl.BlockSpec((tile_rows, K0_pad), lambda i: (i, 0))]   # x row-tile
    flat_args = [x2d_pad]
    for (w_p, b_p, g_p, be_p) in padded_params:
        k_pad, h_pad = w_p.shape
        in_specs.append(pl.BlockSpec((k_pad, h_pad), lambda i: (0, 0)))  # W (resident)
        in_specs.append(pl.BlockSpec((1, h_pad), lambda i: (0, 0)))      # bias
        in_specs.append(pl.BlockSpec((1, h_pad), lambda i: (0, 0)))      # ln gamma
        in_specs.append(pl.BlockSpec((1, h_pad), lambda i: (0, 0)))      # ln beta
        flat_args += [w_p, b_p, g_p, be_p]

    return pl.pallas_call(
        _make_fused_kernel(num_layers, true_hidden),
        out_shape=jax.ShapeDtypeStruct((R_pad, H_last_pad), out_dtype),
        grid_spec=pltpu.PrefetchScalarGridSpec(
            num_scalar_prefetch=0,
            grid=grid,
            in_specs=in_specs,
            out_specs=pl.BlockSpec((tile_rows, H_last_pad), lambda i: (i, 0)),
        ),
        compiler_params=pltpu.CompilerParams(
            dimension_semantics=("parallel",),
            vmem_limit_bytes=48 * 1024 * 1024,   # safe on v7x (64 MiB physical)
        ),
    )(*flat_args)


def init_params(key, input_size, hidden_sizes):
    """Deterministic params mimicking torch.nn.Linear default init + LayerNorm."""
    params = []
    in_size = input_size
    for h in hidden_sizes:
        k_w, k_b, key = jax.random.split(key, 3)
        bound = 1.0 / jnp.sqrt(in_size)
        # Stored already transposed: (in_size, h) so the kernel does x @ W.
        w = jax.random.uniform(k_w, (in_size, h), jnp.float32, -bound, bound)
        b = jax.random.uniform(k_b, (1, h), jnp.float32, -bound, bound)
        gamma = jnp.ones((1, h), jnp.float32)
        beta = jnp.zeros((1, h), jnp.float32)
        params.append((w, b, gamma, beta))
        in_size = h
    return params


@functools.partial(jax.jit, static_argnames=("tile_rows",))
def base_dummy_rnn_forward(inputs, params, *, tile_rows=256):
    """inputs: (B, S, input_size), batch_first=True. Returns (B, S, hidden[-1])."""
    B, S, d_in = inputs.shape
    out_dtype = inputs.dtype
    R = B * S

    # Row tile: large by default, clamped (multiple of SUBLANE) for tiny shapes.
    tr = min(tile_rows, _round_up(R, SUBLANE))
    tr = max(SUBLANE, (tr // SUBLANE) * SUBLANE)
    R_pad = _round_up(R, tr)

    # Lane-dense input: pad feature dim to a multiple of 128, rows to R_pad.
    K0_pad = _round_up(d_in, LANE)
    x2d = inputs.reshape(R, d_in).astype(jnp.bfloat16)
    x2d = jnp.pad(x2d, ((0, R_pad - R), (0, K0_pad - d_in)))

    # Pad every layer's params to lane-dense shapes; padded W rows/cols, bias,
    # gamma, beta are zero so padded lanes stay exactly zero through the stack.
    padded_params = []
    true_hidden = []
    k_pad = K0_pad
    for (w, b, gamma, beta) in params:
        k_true, h = w.shape
        h_pad = _round_up(h, LANE)
        w_p = jnp.zeros((k_pad, h_pad), jnp.bfloat16)
        w_p = w_p.at[:k_true, :h].set(w.astype(jnp.bfloat16))
        b_p = jnp.zeros((1, h_pad), jnp.float32).at[:, :h].set(b)
        g_p = jnp.zeros((1, h_pad), jnp.float32).at[:, :h].set(gamma)
        be_p = jnp.zeros((1, h_pad), jnp.float32).at[:, :h].set(beta)
        padded_params.append((w_p, b_p, g_p, be_p))
        true_hidden.append(h)
        k_pad = h_pad

    y2d = _fused_dummy_rnn(x2d, padded_params, tuple(true_hidden), tr, out_dtype)
    H_last = true_hidden[-1]
    # Module returns (output, None); hidden state is unused in the dummy RNN.
    return y2d[:R, :H_last].reshape(B, S, H_last)


def _reference_forward(inputs, params):
    """Pure-JAX f32 reference of the dummy RNN stack."""
    out = inputs
    for (w, b, gamma, beta) in params:
        y = out @ w + b
        mean = jnp.mean(y, axis=-1, keepdims=True)
        var = jnp.mean((y - mean) ** 2, axis=-1, keepdims=True)
        y = (y - mean) * jax.lax.rsqrt(var + LN_EPS)
        out = jnp.tanh(y * gamma + beta)
    return out


if __name__ == "__main__":
    # Small shapes consistent with the forward: batch=2, seq=8, input_size=16,
    # hidden_size=[32, 32], num_layers=2, batch_first=True.
    B, S, D_IN = 2, 8, 16
    HIDDEN = [32, 32]

    key = jax.random.PRNGKey(0)
    k_x, k_p = jax.random.split(key)
    x = jax.random.normal(k_x, (B, S, D_IN), jnp.float32)
    params = init_params(k_p, D_IN, HIDDEN)

    out = base_dummy_rnn_forward(x, params, tile_rows=256)
    out = jax.block_until_ready(out)

    assert out.shape == (B, S, HIDDEN[-1])
    assert bool(jnp.all(jnp.isfinite(out)))

    # Numerical check vs. pure-JAX f32 reference (bf16 matmul -> loose tol).
    ref = _reference_forward(x, params)
    max_err = float(jnp.max(jnp.abs(out - ref)))
    assert max_err < 1e-1, f"max abs error too large: {max_err}"

    print("KERNEL_OK")
</pallas_src>

<mosaic_0001>
module attributes {stable_mosaic.version = 11 : i64} {
  func.func @kernel(%arg0: i32, %arg1: memref<16x128xbf16, #tpu.memory_space<vmem>>, %arg2: memref<128x128xbf16, #tpu.memory_space<vmem>>, %arg3: memref<1x128xf32, #tpu.memory_space<vmem>>, %arg4: memref<1x128xf32, #tpu.memory_space<vmem>>, %arg5: memref<1x128xf32, #tpu.memory_space<vmem>>, %arg6: memref<128x128xbf16, #tpu.memory_space<vmem>>, %arg7: memref<1x128xf32, #tpu.memory_space<vmem>>, %arg8: memref<1x128xf32, #tpu.memory_space<vmem>>, %arg9: memref<1x128xf32, #tpu.memory_space<vmem>>, %arg10: memref<16x128xf32, #tpu.memory_space<vmem>>) attributes {dimension_semantics = [#tpu.dimension_semantics<parallel>], iteration_bounds = array<i64: 1>, scalar_prefetch = 0 : i64, scratch_operands = 0 : i64, tpu.core_type = #tpu.core_type<tc>, window_params = [{transform_indices = @transform_0, window_bounds = array<i64: 16, 128>}, {pipeline_mode = #tpu.pipeline_mode<synchronous>, transform_indices = @transform_1, window_bounds = array<i64: 128, 128>}, {pipeline_mode = #tpu.pipeline_mode<synchronous>, transform_indices = @transform_2, window_bounds = array<i64: 1, 128>}, {pipeline_mode = #tpu.pipeline_mode<synchronous>, transform_indices = @transform_3, window_bounds = array<i64: 1, 128>}, {pipeline_mode = #tpu.pipeline_mode<synchronous>, transform_indices = @transform_4, window_bounds = array<i64: 1, 128>}, {pipeline_mode = #tpu.pipeline_mode<synchronous>, transform_indices = @transform_5, window_bounds = array<i64: 128, 128>}, {pipeline_mode = #tpu.pipeline_mode<synchronous>, transform_indices = @transform_6, window_bounds = array<i64: 1, 128>}, {pipeline_mode = #tpu.pipeline_mode<synchronous>, transform_indices = @transform_7, window_bounds = array<i64: 1, 128>}, {pipeline_mode = #tpu.pipeline_mode<synchronous>, transform_indices = @transform_8, window_bounds = array<i64: 1, 128>}, {transform_indices = @transform_9, window_bounds = array<i64: 16, 128>}]} {
    %c0 = arith.constant 0 : index
    %c0_0 = arith.constant 0 : index
    %0 = vector.load %arg1[%c0, %c0_0] : memref<16x128xbf16, #tpu.memory_space<vmem>>, vector<16x128xbf16>
    %c0_1 = arith.constant 0 : index
    %c0_2 = arith.constant 0 : index
    %1 = vector.load %arg2[%c0_1, %c0_2] : memref<128x128xbf16, #tpu.memory_space<vmem>>, vector<128x128xbf16>
    %cst = arith.constant dense<0.000000e+00> : vector<16x128xf32>
    %2 = tpu.matmul %0, %1, %cst {dimension_numbers = #tpu.dot_dimension_numbers<[1], [0], [0], [1], [0, 0, 1, 1], [], []>} : vector<16x128xbf16>, vector<128x128xbf16>, vector<16x128xf32> -> vector<16x128xf32>
    %c0_3 = arith.constant 0 : index
    %c0_4 = arith.constant 0 : index
    %3 = vector.load %arg3[%c0_3, %c0_4] : memref<1x128xf32, #tpu.memory_space<vmem>>, vector<1x128xf32>
    %4 = vector.broadcast %3 : vector<1x128xf32> to vector<16x128xf32>
    %5 = arith.addf %2, %4 : vector<16x128xf32>
    %cst_5 = arith.constant dense<0.000000e+00> : vector<16xf32>
    %6 = vector.multi_reduction <add>, %5, %cst_5 [1] : vector<16x128xf32> to vector<16xf32>
    %7 = vector.shape_cast %6 : vector<16xf32> to vector<16x1xf32>
    %8 = arith.mulf %5, %5 : vector<16x128xf32>
    %cst_6 = arith.constant dense<0.000000e+00> : vector<16xf32>
    %9 = vector.multi_reduction <add>, %8, %cst_6 [1] : vector<16x128xf32> to vector<16xf32>
    %10 = vector.shape_cast %9 : vector<16xf32> to vector<16x1xf32>
    %cst_7 = arith.constant 3.125000e-02 : f32
    %11 = vector.broadcast %cst_7 : f32 to vector<16x1xf32>
    %12 = arith.mulf %7, %11 : vector<16x1xf32>
    %cst_8 = arith.constant 3.125000e-02 : f32
    %13 = vector.broadcast %cst_8 : f32 to vector<16x1xf32>
    %14 = arith.mulf %10, %13 : vector<16x1xf32>
    %15 = arith.mulf %12, %12 : vector<16x1xf32>
    %16 = arith.subf %14, %15 : vector<16x1xf32>
    %cst_9 = arith.constant 0.000000e+00 : f32
    %17 = vector.broadcast %cst_9 : f32 to vector<16x1xf32>
    %18 = arith.maximumf %16, %17 : vector<16x1xf32>
    %19 = vector.broadcast %12 : vector<16x1xf32> to vector<16x128xf32>
    %20 = arith.subf %5, %19 : vector<16x128xf32>
    %cst_10 = arith.constant 9.99999974E-6 : f32
    %21 = vector.broadcast %cst_10 : f32 to vector<16x1xf32>
    %22 = arith.addf %18, %21 : vector<16x1xf32>
    %23 = math.rsqrt %22 : vector<16x1xf32>
    %24 = vector.broadcast %23 : vector<16x1xf32> to vector<16x128xf32>
    %25 = arith.mulf %20, %24 : vector<16x128xf32>
    %c0_11 = arith.constant 0 : index
    %c0_12 = arith.constant 0 : index
    %26 = vector.load %arg4[%c0_11, %c0_12] : memref<1x128xf32, #tpu.memory_space<vmem>>, vector<1x128xf32>
    %27 = vector.broadcast %26 : vector<1x128xf32> to vector<16x128xf32>
    %28 = arith.mulf %25, %27 : vector<16x128xf32>
    %c0_13 = arith.constant 0 : index
    %c0_14 = arith.constant 0 : index
    %29 = vector.load %arg5[%c0_13, %c0_14] : memref<1x128xf32, #tpu.memory_space<vmem>>, vector<1x128xf32>
    %30 = vector.broadcast %29 : vector<1x128xf32> to vector<16x128xf32>
    %31 = arith.addf %28, %30 : vector<16x128xf32>
    %32 = math.tanh %31 : vector<16x128xf32>
    %33 = arith.truncf %32 : vector<16x128xf32> to vector<16x128xbf16>
    %c0_15 = arith.constant 0 : index
    %c0_16 = arith.constant 0 : index
    %34 = vector.load %arg6[%c0_15, %c0_16] : memref<128x128xbf16, #tpu.memory_space<vmem>>, vector<128x128xbf16>
    %cst_17 = arith.constant dense<0.000000e+00> : vector<16x128xf32>
    %35 = tpu.matmul %33, %34, %cst_17 {dimension_numbers = #tpu.dot_dimension_numbers<[1], [0], [0], [1], [0, 0, 1, 1], [], []>} : vector<16x128xbf16>, vector<128x128xbf16>, vector<16x128xf32> -> vector<16x128xf32>
    %c0_18 = arith.constant 0 : index
    %c0_19 = arith.constant 0 : index
    %36 = vector.load %arg7[%c0_18, %c0_19] : memref<1x128xf32, #tpu.memory_space<vmem>>, vector<1x128xf32>
    %37 = vector.broadcast %36 : vector<1x128xf32> to vector<16x128xf32>
    %38 = arith.addf %35, %37 : vector<16x128xf32>
    %cst_20 = arith.constant dense<0.000000e+00> : vector<16xf32>
    %39 = vector.multi_reduction <add>, %38, %cst_20 [1] : vector<16x128xf32> to vector<16xf32>
    %40 = vector.shape_cast %39 : vector<16xf32> to vector<16x1xf32>
    %41 = arith.mulf %38, %38 : vector<16x128xf32>
    %cst_21 = arith.constant dense<0.000000e+00> : vector<16xf32>
    %42 = vector.multi_reduction <add>, %41, %cst_21 [1] : vector<16x128xf32> to vector<16xf32>
    %43 = vector.shape_cast %42 : vector<16xf32> to vector<16x1xf32>
    %cst_22 = arith.constant 3.125000e-02 : f32
    %44 = vector.broadcast %cst_22 : f32 to vector<16x1xf32>
    %45 = arith.mulf %40, %44 : vector<16x1xf32>
    %cst_23 = arith.constant 3.125000e-02 : f32
    %46 = vector.broadcast %cst_23 : f32 to vector<16x1xf32>
    %47 = arith.mulf %43, %46 : vector<16x1xf32>
    %48 = arith.mulf %45, %45 : vector<16x1xf32>
    %49 = arith.subf %47, %48 : vector<16x1xf32>
    %cst_24 = arith.constant 0.000000e+00 : f32
    %50 = vector.broadcast %cst_24 : f32 to vector<16x1xf32>
    %51 = arith.maximumf %49, %50 : vector<16x1xf32>
    %52 = vector.broadcast %45 : vector<16x1xf32> to vector<16x128xf32>
    %53 = arith.subf %38, %52 : vector<16x128xf32>
    %cst_25 = arith.constant 9.99999974E-6 : f32
    %54 = vector.broadcast %cst_25 : f32 to vector<16x1xf32>
    %55 = arith.addf %51, %54 : vector<16x1xf32>
    %56 = math.rsqrt %55 : vector<16x1xf32>
    %57 = vector.broadcast %56 : vector<16x1xf32> to vector<16x128xf32>
    %58 = arith.mulf %53, %57 : vector<16x128xf32>
    %c0_26 = arith.constant 0 : index
    %c0_27 = arith.constant 0 : index
    %59 = vector.load %arg8[%c0_26, %c0_27] : memref<1x128xf32, #tpu.memory_space<vmem>>, vector<1x128xf32>
    %60 = vector.broadcast %59 : vector<1x128xf32> to vector<16x128xf32>
    %61 = arith.mulf %58, %60 : vector<16x128xf32>
    %c0_28 = arith.constant 0 : index
    %c0_29 = arith.constant 0 : index
    %62 = vector.load %arg9[%c0_28, %c0_29] : memref<1x128xf32, #tpu.memory_space<vmem>>, vector<1x128xf32>
    %63 = vector.broadcast %62 : vector<1x128xf32> to vector<16x128xf32>
    %64 = arith.addf %61, %63 : vector<16x128xf32>
    %65 = math.tanh %64 : vector<16x128xf32>
    %c0_30 = arith.constant 0 : index
    %c0_31 = arith.constant 0 : index
    %66 = vector.load %arg10[%c0_30, %c0_31] : memref<16x128xf32, #tpu.memory_space<vmem>>, vector<16x128xf32>
    tpu.vector_store %arg10[%c0_30, %c0_31], %65 {strides = array<i32>} : memref<16x128xf32, #tpu.memory_space<vmem>>, vector<16x128xf32>,
    return
  }
  func.func @transform_0(%arg0: i32) -> (i32, i32) {
    %c0_i32 = arith.constant 0 : i32
    %c0_i32_0 = arith.constant 0 : i32
    return %arg0, %c0_i32 : i32, i32
  }
  func.func @transform_1(%arg0: i32) -> (i32, i32) {
    %c0_i32 = arith.constant 0 : i32
    %c0_i32_0 = arith.constant 0 : i32
    %c0_i32_1 = arith.constant 0 : i32
    return %c0_i32, %c0_i32_0 : i32, i32
  }
  func.func @transform_2(%arg0: i32) -> (i32, i32) {
    %c0_i32 = arith.constant 0 : i32
    %c0_i32_0 = arith.constant 0 : i32
    %c0_i32_1 = arith.constant 0 : i32
    return %c0_i32, %c0_i32_0 : i32, i32
  }
  func.func @transform_3(%arg0: i32) -> (i32, i32) {
    %c0_i32 = arith.constant 0 : i32
    %c0_i32_0 = arith.constant 0 : i32
    %c0_i32_1 = arith.constant 0 : i32
    return %c0_i32, %c0_i32_0 : i32, i32
  }
  func.func @transform_4(%arg0: i32) -> (i32, i32) {
    %c0_i32 = arith.constant 0 : i32
    %c0_i32_0 = arith.constant 0 : i32
    %c0_i32_1 = arith.constant 0 : i32
    return %c0_i32, %c0_i32_0 : i32, i32
  }
  func.func @transform_5(%arg0: i32) -> (i32, i32) {
    %c0_i32 = arith.constant 0 : i32
    %c0_i32_0 = arith.constant 0 : i32
    %c0_i32_1 = arith.constant 0 : i32
    return %c0_i32, %c0_i32_0 : i32, i32
  }
  func.func @transform_6(%arg0: i32) -> (i32, i32) {
    %c0_i32 = arith.constant 0 : i32
    %c0_i32_0 = arith.constant 0 : i32
    %c0_i32_1 = arith.constant 0 : i32
    return %c0_i32, %c0_i32_0 : i32, i32
  }
  func.func @transform_7(%arg0: i32) -> (i32, i32) {
    %c0_i32 = arith.constant 0 : i32
    %c0_i32_0 = arith.constant 0 : i32
    %c0_i32_1 = arith.constant 0 : i32
    return %c0_i32, %c0_i32_0 : i32, i32
  }
  func.func @transform_8(%arg0: i32) -> (i32, i32) {
    %c0_i32 = arith.constant 0 : i32
    %c0_i32_0 = arith.constant 0 : i32
    %c0_i32_1 = arith.constant 0 : i32
    return %c0_i32, %c0_i32_0 : i32, i32
  }
  func.func @transform_9(%arg0: i32) -> (i32, i32) {
    %c0_i32 = arith.constant 0 : i32
    %c0_i32_0 = arith.constant 0 : i32
    return %arg0, %c0_i32 : i32, i32
  }
}

</mosaic_0001>

<bundles_post_ra>
// kernel: base_dummy_rnn_forward.1
= control target key start
LH: loop header
LB: loop body
LE: loop exit
PB: predicated region body
PF: predicated region fallthrough
CT: control target
= control target key end

     0   :  { %s569_s1 = inlined_call_operand.vmem [shape: bf16[128,128], index: 1, kind: input, shape index: {}]   ;;  %s570_s2 = inlined_call_operand.vmem [shape: f32[1,128], index: 2, kind: input, shape index: {}]   ;;  %s571_s0 = inlined_call_operand.vmem [shape: bf16[16,128], index: 0, kind: input, shape index: {}]   ;;  %s572_s3 = inlined_call_operand.vmem [shape: f32[1,128], index: 3, kind: input, shape index: {}]   ;;  %s573_s4 = inlined_call_operand.vmem [shape: f32[1,128], index: 4, kind: input, shape index: {}]   ;;  %s574_s6 = inlined_call_operand.vmem [shape: f32[1,128], index: 6, kind: input, shape index: {}]   ;;  %s575_s5 = inlined_call_operand.vmem [shape: bf16[128,128], index: 5, kind: input, shape index: {}]   ;;  %s576_s7 = inlined_call_operand.vmem [shape: f32[1,128], index: 7, kind: input, shape index: {}]   ;;  %s577_s8 = inlined_call_operand.vmem [shape: f32[1,128], index: 8, kind: input, shape index: {}]   ;;  %s578_s9 = inlined_call_operand.vmem [shape: f32[16,128], index: 9, kind: output, shape index: {}]  }
   0x1   :  { %v407_v0 = vld [vmem:[%s569_s1 + $0x38] sm:$0xff]  ;;  %v406_v1 = vld [vmem:[%s569_s1 + $0x30] sm:$0xff]  ;;  %v405_v2 = vld [vmem:[%s569_s1 + $0x28] sm:$0xff] }
   0x2   :  { %108 = vmatpush.bf16.msra.mxu0 %v407_v0  ;;  %v404_v3 = vld [vmem:[%s569_s1 + $0x20] sm:$0xff]  ;;  %v403_v4 = vld [vmem:[%s569_s1 + $0x18] sm:$0xff]  ;;  %v402_v5 = vld [vmem:[%s569_s1 + $0x10] sm:$0xff] }
   0x3   :  { %v401_v6 = vld [vmem:[%s569_s1 + $0x8] sm:$0xff]  ;;  %v400_v7 = vld [vmem:[%s569_s1] sm:$0xff]  ;;  %v415_v16 = vld [vmem:[%s575_s5 + $0x38] sm:$0xff] }
   0x4   :  { %v399_v8 = vld [vmem:[%s571_s0] sm:$0xff]  ;;  %251 = vmatpush.bf16.msra.mxu1 %v415_v16  ;;  %v414_v17 = vld [vmem:[%s575_s5 + $0x30] sm:$0xff]  ;;  %v413_v18 = vld [vmem:[%s575_s5 + $0x28] sm:$0xff] }
   0x5   :  { %v416_v9 = vld [vmem:[%s570_s2] ss:$0 sm:$0xff]  ;;  %v411_v25 = vld [vmem:[%s575_s5 + $0x18] sm:$0xff]  ;;  %v410_v27 = vld [vmem:[%s575_s5 + $0x10] sm:$0xff] }
   0x6   :  { %109 = vmatpush.bf16.msra.mxu0 %v406_v1  ;;  %v412_v20 = vld [vmem:[%s575_s5 + $0x20] sm:$0xff]  ;;  %v409_v33 = vld [vmem:[%s575_s5 + $0x8] sm:$0xff] }
   0x7   :  { %v408_v37 = vld [vmem:[%s575_s5] sm:$0xff] }
   0x8   :  { %252 = vmatpush.bf16.msra.mxu1 %v414_v17  ;;  %v417_v53 = vld [vmem:[%s572_s3] ss:$0 sm:$0xff] }
   0x9   :  { %v418_v57 = vld [vmem:[%s573_s4] ss:$0 sm:$0xff] }
   0xa   :  { %110 = vmatpush.bf16.msra.mxu0 %v405_v2 }
   0xc   :  { %253 = vmatpush.bf16.msra.mxu1 %v413_v18 }
   0xe   :  { %111 = vmatpush.bf16.msra.mxu0 %v404_v3  ;;  %v419_v3 = vld [vmem:[%s574_s6] ss:$0 sm:$0xff] }
  0x10   :  { %254 = vmatpush.bf16.msra.mxu1 %v412_v20 }
  0x12   :  { %112 = vmatpush.bf16.msra.mxu0 %v403_v4 }
  0x14   :  { %255 = vmatpush.bf16.msra.mxu1 %v411_v25 }
  0x16   :  { %113 = vmatpush.bf16.msra.mxu0 %v402_v5 }
  0x18   :  { %256 = vmatpush.bf16.msra.mxu1 %v410_v27 }
  0x1a   :  { %114 = vmatpush.bf16.msra.mxu0 %v401_v6 }
  0x1c   :  { %257 = vmatpush.bf16.msra.mxu1 %v409_v33 }
  0x1e   :  { %115 = vmatpush.bf16.msra.mxu0 %v400_v7 }
  0x20   :  { %258 = vmatpush.bf16.msra.mxu1 %v408_v37  ;;  %v421_v37 = vld [vmem:[%s577_s8] ss:$0 sm:$0xff] }
  0x21   :  { %116 = vmatmul.bf16.vlgmr.msra.gmra.mxu0 %v399_v8 }
  0x9e   :  { %v117_v10 = vpop.f32.mrf.mxu0 }
  0x9f   :  { %v118_v11 = vadd.f32 %v416_v9, %v117_v10 }
  0xa1   :  { %122 = vadd.xlane.f32.xlu0 %v118_v11  ;;  %v126_v12 = vmul.f32 %v118_v11, %v118_v11 }
  0xa3   :  { %128 = vadd.xlane.f32.xlu1 %v126_v12 }
  0xa6   :  { %v119_v13 = vpop.f32.mrf.mxu0 }
  0xa7   :  { %v518_v14 = vadd.f32 %v416_v9, %v119_v13 }
  0xa9   :  { %124 = vadd.xlane.f32.xlu0 %v518_v14  ;;  %v127_v15 = vmul.f32 %v518_v14, %v518_v14 }
  0xab   :  { %130 = vadd.xlane.f32.xlu1 %v127_v15 }
 0x114   :  { %v123_v19 = vpop.xlane.xlu0 %122 }
 0x115   :  { %v132_v21 = vmul.f32 0.03125, %v123_v19 }
 0x116   :  { %v129_v22 = vpop.xlane.xlu1 %128 }
 0x117   :  { %v136_v23 = vmul.f32 %v132_v21, %v132_v21  ;;  %v134_v24 = vmul.f32 0.03125, %v129_v22  ;;  %v142_v49 = vsub.f32 %v118_v11, %v132_v21 }
 0x119   :  { %v138_v26 = vsub.f32 %v134_v24, %v136_v23 }
 0x11b   :  { %v140_v28 = vmax.f32 %v138_v26, 0.0 }
 0x11c   :  { %v125_v29 = vpop.xlane.xlu0 %124 }
 0x11d   :  { %v144_v30 = vadd.f32 1e-05, %v140_v28  ;;  %v133_v31 = vmul.f32 0.03125, %v125_v29 }
 0x11e   :  { %v131_v32 = vpop.xlane.xlu1 %130 }
 0x11f   :  { %422 = vrsqrt.f32 %v144_v30  ;;  %v137_v34 = vmul.f32 %v133_v31, %v133_v31  ;;  %v135_v35 = vmul.f32 0.03125, %v131_v32  ;;  %vm152_vm1 = vweird.f32 %v144_v30 }
 0x120   :  { %v143_v58 = vsub.f32 %v518_v14, %v133_v31 }
 0x121   :  { %v139_v36 = vsub.f32 %v135_v35, %v137_v34  ;;  %v420_v34 = vld [vmem:[%s576_s7] ss:$0 sm:$0xff] }
 0x123   :  { %v141_v38 = vmax.f32 %v139_v36, 0.0 }
 0x125   :  { %v423_v39 = vpop.eup %422  ;;  %v145_v41 = vadd.f32 1e-05, %v141_v38 }
 0x126   :  { %v147_v40 = vmul.f32 %v423_v39, %v144_v30  ;;  %vm153_vm0 = vweird.f32 %v423_v39 }
 0x127   :  { %424 = vrsqrt.f32 %v145_v41  ;;  %vm154_vm2 = vmor %vm152_vm1, %vm153_vm0  ;;  %vm162_vm4 = vweird.f32 %v145_v41 }
 0x128   :  { %v148_v42 = vmul.f32 %v423_v39, %v147_v40 }
 0x12a   :  { %v149_v43 = vmul.f32 0.5, %v148_v42 }
 0x12c   :  { %v150_v44 = vsub.f32 1.5, %v149_v43 }
 0x12d   :  { %v425_v45 = vpop.eup %424 }
 0x12e   :  { %v151_v46 = vmul.f32 %v423_v39, %v150_v44  ;;  %v157_v47 = vmul.f32 %v425_v45, %v145_v41  ;;  %vm163_vm3 = vweird.f32 %v425_v45 }
 0x12f   :  { %vm164_vm5 = vmor %vm162_vm4, %vm163_vm3 }
 0x130   :  { %v155_v48 = vsel %vm154_vm2, %v423_v39, %v151_v46  ;;  %v158_v50 = vmul.f32 %v425_v45, %v157_v47 }
 0x131   :  { %v166_v51 = vmul.f32 %v155_v48, %v142_v49 }
 0x132   :  { %v159_v52 = vmul.f32 0.5, %v158_v50 }
 0x133   :  { %v172_v56 = vmul.f32 %v417_v53, %v166_v51 }
 0x134   :  { %v160_v54 = vsub.f32 1.5, %v159_v52 }
 0x135   :  { %v178_v61 = vadd.f32 %v418_v57, %v172_v56 }
 0x136   :  { %v161_v55 = vmul.f32 %v425_v45, %v160_v54 }
 0x137   :  { %426 = vtanh.f32 %v178_v61 }
 0x138   :  { %v165_v59 = vsel %vm164_vm5, %v425_v45, %v161_v55 }
 0x139   :  { %v167_v60 = vmul.f32 %v165_v59, %v143_v58 }
 0x13b   :  { %v173_v62 = vmul.f32 %v417_v53, %v167_v60 }
 0x13d   :  { %v179_v63 = vadd.f32 %v418_v57, %v173_v62  ;;  %v427_v0 = vpop.eup %426 }
 0x13f   :  { %428 = vtanh.f32 %v179_v63 }
 0x145   :  { %v429_v1 = vpop.eup %428 }
 0x146   :  { %v182_v2 = vpack.c.bf16 %v429_v1, %v427_v0 }
 0x148   :  { %259 = vmatmul.bf16.vlgmr.msra.gmra.mxu1 %v182_v2 }
 0x1c5   :  { %v260_v4 = vpop.f32.mrf.mxu1 }
 0x1c6   :  { %v261_v5 = vadd.f32 %v419_v3, %v260_v4 }
 0x1c8   :  { %265 = vadd.xlane.f32.xlu2 %v261_v5  ;;  %v269_v6 = vmul.f32 %v261_v5, %v261_v5 }
 0x1ca   :  { %271 = vadd.xlane.f32.xlu0 %v269_v6 }
 0x1cd   :  { %v262_v7 = vpop.f32.mrf.mxu1 }
 0x1ce   :  { %v263_v8 = vadd.f32 %v419_v3, %v262_v7 }
 0x1d0   :  { %267 = vadd.xlane.f32.xlu2 %v263_v8  ;;  %v270_v9 = vmul.f32 %v263_v8, %v263_v8 }
 0x1d2   :  { %273 = vadd.xlane.f32.xlu1 %v270_v9 }
 0x23b   :  { %v266_v10 = vpop.xlane.xlu2 %265 }
 0x23c   :  { %v275_v11 = vmul.f32 0.03125, %v266_v10 }
 0x23d   :  { %v272_v12 = vpop.xlane.xlu0 %271 }
 0x23e   :  { %v279_v13 = vmul.f32 %v275_v11, %v275_v11  ;;  %v277_v14 = vmul.f32 0.03125, %v272_v12  ;;  %v285_v33 = vsub.f32 %v261_v5, %v275_v11 }
 0x240   :  { %v281_v15 = vsub.f32 %v277_v14, %v279_v13 }
 0x242   :  { %v283_v16 = vmax.f32 %v281_v15, 0.0 }
 0x243   :  { %v268_v17 = vpop.xlane.xlu2 %267 }
 0x244   :  { %v287_v18 = vadd.f32 1e-05, %v283_v16  ;;  %v276_v19 = vmul.f32 0.03125, %v268_v17 }
 0x245   :  { %v274_v20 = vpop.xlane.xlu1 %273 }
 0x246   :  { %430 = vrsqrt.f32 %v287_v18  ;;  %v280_v21 = vmul.f32 %v276_v19, %v276_v19  ;;  %v278_v22 = vmul.f32 0.03125, %v274_v20  ;;  %vm295_vm7 = vweird.f32 %v287_v18 }
 0x247   :  { %v286_v45 = vsub.f32 %v263_v8, %v276_v19 }
 0x248   :  { %v282_v23 = vsub.f32 %v278_v22, %v280_v21 }
 0x24a   :  { %v284_v24 = vmax.f32 %v282_v23, 0.0 }
 0x24c   :  { %v431_v25 = vpop.eup %430  ;;  %v288_v27 = vadd.f32 1e-05, %v284_v24 }
 0x24d   :  { %v290_v26 = vmul.f32 %v431_v25, %v287_v18  ;;  %vm296_vm6 = vweird.f32 %v431_v25 }
 0x24e   :  { %432 = vrsqrt.f32 %v288_v27  ;;  %vm297_vm8 = vmor %vm295_vm7, %vm296_vm6  ;;  %vm305_vm10 = vweird.f32 %v288_v27 }
 0x24f   :  { %v291_v28 = vmul.f32 %v431_v25, %v290_v26 }
 0x251   :  { %v292_v29 = vmul.f32 0.5, %v291_v28 }
 0x253   :  { %v293_v30 = vsub.f32 1.5, %v292_v29 }
 0x254   :  { %v433_v31 = vpop.eup %432 }
 0x255   :  { %v294_v32 = vmul.f32 %v431_v25, %v293_v30  ;;  %v300_v35 = vmul.f32 %v433_v31, %v288_v27  ;;  %vm306_vm9 = vweird.f32 %v433_v31 }
 0x256   :  { %vm307_vm11 = vmor %vm305_vm10, %vm306_vm9 }
 0x257   :  { %v298_v36 = vsel %vm297_vm8, %v431_v25, %v294_v32  ;;  %v301_v39 = vmul.f32 %v433_v31, %v300_v35 }
 0x258   :  { %v309_v38 = vmul.f32 %v298_v36, %v285_v33 }
 0x259   :  { %v302_v41 = vmul.f32 0.5, %v301_v39 }
 0x25a   :  { %v315_v40 = vmul.f32 %v420_v34, %v309_v38 }
 0x25b   :  { %v303_v43 = vsub.f32 1.5, %v302_v41 }
 0x25c   :  { %v321_v42 = vadd.f32 %v421_v37, %v315_v40 }
 0x25d   :  { %v304_v44 = vmul.f32 %v433_v31, %v303_v43 }
 0x25e   :  { %434 = vtanh.f32 %v321_v42 }
 0x25f   :  { %v308_v46 = vsel %vm307_vm11, %v433_v31, %v304_v44 }
 0x260   :  { %v310_v47 = vmul.f32 %v308_v46, %v286_v45 }
 0x262   :  { %v316_v48 = vmul.f32 %v420_v34, %v310_v47 }
 0x264   :  { %v435_v49 = vpop.eup %434  ;;  %v322_v50 = vadd.f32 %v421_v37, %v316_v48 }
 0x265   :  { %325 = vst [vmem:[%s578_s9] sm:$0xff] %v435_v49 }
 0x266   :  { %436 = vtanh.f32 %v322_v50 }
 0x26c   :  { %v437_v51 = vpop.eup %436 }
 0x26d   :  { %326 = vst [vmem:[%s578_s9 + $0x8] sm:$0xff] %v437_v51 }

</bundles_post_ra>
